<compile_context>
chip_gen: v7x
topology: tpu7x:2x2x1
jax: 0.10.0
libtpu: 0.0.40
codegen_flags: <defaults>
</compile_context>

<pallas_src>
import functools

import jax
import jax.numpy as jnp
from jax.experimental import pallas as pl
from jax.experimental.pallas import tpu as pltpu

_LANES = 128


def _round_up(x, m):
    return -(-x // m) * m


def _head_kernel(xT_ref, labels_ref, w1T_ref, b1_ref, gamma_ref, beta_ref,
                 w2_ref, b2_ref, out_ref, sse_ref, *, n_valid):
    tile_b = out_ref.shape[1]

    # --- Linear(in_dim, mid_dim) on the MXU, transposed layout ---
    # (mid_dim, in_dim) @ (in_dim, tile_b) -> (mid_dim, tile_b), f32 accumulation.
    h = jnp.dot(w1T_ref[...], xT_ref[...], preferred_element_type=jnp.float32)
    h = h + b1_ref[...]                                   # (mid_dim, 1) lane-broadcast

    # --- LeakyReLU(0.2) ---
    h = jnp.where(h >= 0, h, 0.2 * h)

    # --- LayerNorm(mid_dim), eps=1e-5, biased variance; features on sublanes ---
    mean = jnp.mean(h, axis=0, keepdims=True)             # (1, tile_b)
    centered = h - mean
    var = jnp.mean(centered * centered, axis=0, keepdims=True)
    h = centered * jax.lax.rsqrt(var + 1e-5)
    h = h * gamma_ref[...] + beta_ref[...]

    # --- Linear(mid_dim, 1): VPU multiply + sublane reduce -> lane-dense logits ---
    logits = jnp.sum(h * w2_ref[...], axis=0, keepdims=True) + b2_ref[0, 0]  # (1, tile_b)

    # --- Sigmoid (exp + exact reciprocal; both live on the otherwise idle EUP) ---
    y = pl.reciprocal(1.0 + jnp.exp(-logits), approx=False)
    out_ref[...] = y                                       # lane-dense store

    # --- per-tile sum of squared errors (mean finished in the wrapper) ---
    tile = pl.program_id(0)
    last = pl.num_programs(0) - 1

    def _write_sse(diff):
        ssum = jnp.sum(diff * diff, axis=1, keepdims=True)  # (1, 1) scalar partial
        sse_ref[...] = ssum + jnp.zeros_like(sse_ref)       # broadcast into the row

    @pl.when(tile != last)
    def _():                                   # full tiles: no mask work at all
        _write_sse(y - labels_ref[...])

    @pl.when(tile == last)
    def _():                                   # only the last tile can hold padded rows
        col = jax.lax.broadcasted_iota(jnp.int32, (1, tile_b), 1)
        valid = (tile * tile_b + col) < n_valid
        _write_sse(jnp.where(valid, y - labels_ref[...], 0.0))


def precompute_feature_table(ent_emb, content_emb, num_emb, dtype=jnp.bfloat16):
    """One-time precompute: concat([ent, content, num], axis=1), cast for bf16 MXU/DMA."""
    return jnp.concatenate([ent_emb, content_emb, num_emb], axis=1).astype(dtype)


def evaluate_model_forward(indices, scores, feature_table, params, *,
                           max_tile_b=8192, vmem_budget_bytes=12 * 1024 * 1024):
    """Single gather from the pre-concatenated table, then a batch-gridded Pallas
    kernel (transposed cls_head + masked MSE partial sums)."""
    w1, b1, gamma, beta, w2, b2 = params
    _, in_dim = feature_table.shape
    mid_dim = w1.shape[1]
    B = int(indices.shape[0])
    act_dtype = feature_table.dtype
    act_bytes = jnp.dtype(act_dtype).itemsize

    # --- tile sizing with a lane/sublane-padded VMEM model ---
    b_pad128 = _round_up(B, _LANES)
    sublane_pack = 32 // act_bytes                       # rows/packed-sublane: f32->8, bf16->16
    in_pad = _round_up(in_dim, sublane_pack)
    mid_pad = _round_up(mid_dim, 8)
    per_row = (2 * in_pad * act_bytes                    # xT tile, double-buffered
               + 2 * 2 * 8 * 4                           # labels + out (1,t) tiles, 2 bufs, 8 sublanes
               + 4 * mid_pad * 4)                        # h + friends (f32 temporaries)
    rows_cap = max(_LANES, (vmem_budget_bytes // per_row) // _LANES * _LANES)

    # v7x has 2 TensorCores: keep >= 2 grid tiles whenever the batch allows it.
    if b_pad128 >= 2 * _LANES:
        core_cap = max(_LANES, (b_pad128 // (2 * _LANES)) * _LANES)
    else:
        core_cap = b_pad128
    tile_b = max(_LANES, (min(max_tile_b, rows_cap, core_cap) // _LANES) * _LANES)
    b_pad = _round_up(b_pad128, tile_b)
    num_tiles = b_pad // tile_b

    # --- pad the (tiny) index/label vectors, not the gathered activations ---
    pad = b_pad - B
    idx_pad = jnp.pad(indices, (0, pad))                               # index 0 is valid
    labels = jnp.pad(scores.astype(jnp.float32), (0, pad)).reshape(1, b_pad)

    # TODO(synk): fuse this gather (+ transpose) into the kernel via scalar-prefetched
    # indices and per-row DMA from the HBM-resident table to drop the remaining HBM
    # round trip of the gathered activations.
    x_rows = jnp.take(feature_table, idx_pad, axis=0)                  # (b_pad, in_dim)
    xT = x_rows.T                                                      # (in_dim, b_pad): batch on lanes

    # --- tiny params reshaped for the transposed head ---
    w1T = w1.T.astype(act_dtype)                                       # (mid_dim, in_dim)
    b1c = b1.reshape(mid_dim, 1).astype(jnp.float32)
    gc = gamma.reshape(mid_dim, 1).astype(jnp.float32)
    bc = beta.reshape(mid_dim, 1).astype(jnp.float32)
    w2c = w2.reshape(mid_dim, 1).astype(jnp.float32)
    b2s = b2.reshape(1, 1).astype(jnp.float32)

    kernel = functools.partial(_head_kernel, n_valid=B)

    in_specs = [
        pl.BlockSpec((in_dim, tile_b), lambda i: (0, i)),       # xT: batch rows on lanes
        pl.BlockSpec((1, tile_b), lambda i: (0, i)),            # labels, lane-dense
        pl.BlockSpec((mid_dim, in_dim), lambda i: (0, 0)),      # W1^T (resident)
        pl.BlockSpec((mid_dim, 1), lambda i: (0, 0)),           # b1
        pl.BlockSpec((mid_dim, 1), lambda i: (0, 0)),           # gamma
        pl.BlockSpec((mid_dim, 1), lambda i: (0, 0)),           # beta
        pl.BlockSpec((mid_dim, 1), lambda i: (0, 0)),           # w2
        pl.BlockSpec(memory_space=pltpu.MemorySpace.SMEM),      # b2 scalar
    ]
    out_specs = (
        pl.BlockSpec((1, tile_b), lambda i: (0, i)),            # lane-dense predictions
        pl.BlockSpec((1, _LANES), lambda i: (i, 0)),            # per-tile SSE partial row
    )
    out_shape = (
        jax.ShapeDtypeStruct((1, b_pad), jnp.float32),
        jax.ShapeDtypeStruct((num_tiles, _LANES), jnp.float32),
    )

    out_dense, sse = pl.pallas_call(
        kernel,
        grid=(num_tiles,),
        in_specs=in_specs,
        out_specs=out_specs,
        out_shape=out_shape,
        compiler_params=pltpu.CompilerParams(
            dimension_semantics=("parallel",),
            vmem_limit_bytes=32 * 1024 * 1024),
    )(xT, labels, w1T, b1c, gc, bc, w2c, b2s)

    ent_scores = out_dense[0, :B]
    loss = jnp.sum(sse[:, 0]) / B
    return ent_scores, loss


def make_params(key, in_dim, mid_dim):
    """Deterministic synthetic parameters mirroring torch.nn layer shapes."""
    k1, k2, k3, k4 = jax.random.split(key, 4)
    # Linear(in_dim, mid_dim): torch stores (mid, in); keep transposed (in, mid).
    w1 = (jax.random.uniform(k1, (in_dim, mid_dim), jnp.float32, -1.0, 1.0)
          / jnp.sqrt(in_dim))
    b1 = (jax.random.uniform(k2, (1, mid_dim), jnp.float32, -1.0, 1.0)
          / jnp.sqrt(in_dim))
    gamma = jnp.ones((1, mid_dim), jnp.float32)
    beta = jnp.zeros((1, mid_dim), jnp.float32)
    w2 = (jax.random.uniform(k3, (mid_dim, 1), jnp.float32, -1.0, 1.0)
          / jnp.sqrt(mid_dim))
    b2 = (jax.random.uniform(k4, (1, 1), jnp.float32, -1.0, 1.0)
          / jnp.sqrt(mid_dim))
    return (w1, b1, gamma, beta, w2, b2)


def reference_forward(indices, scores, ent_emb, content_emb, num_emb, params,
                      act_dtype=jnp.bfloat16):
    """Pure-JAX reference mirroring the PyTorch forward (concat + full matmuls),
    with the embeddings / W1 rounded through the same activation dtype the kernel
    uses so the comparison is apples-to-apples."""
    w1, b1, gamma, beta, w2, b2 = params
    x = jnp.concatenate([ent_emb[indices], content_emb[indices], num_emb[indices]], axis=1)
    x = x.astype(act_dtype).astype(jnp.float32)
    w1f = w1.astype(act_dtype).astype(jnp.float32)
    h = jnp.dot(x, w1f, precision=jax.lax.Precision.HIGHEST) + b1
    h = jnp.where(h >= 0, h, 0.2 * h)
    mean = jnp.mean(h, axis=-1, keepdims=True)
    var = jnp.mean((h - mean) ** 2, axis=-1, keepdims=True)
    h = (h - mean) * jax.lax.rsqrt(var + 1e-5) * gamma + beta
    logits = jnp.dot(h, w2, precision=jax.lax.Precision.HIGHEST) + b2
    y = (1.0 / (1.0 + jnp.exp(-logits)))[:, 0]
    loss = jnp.mean((y - scores) ** 2)
    return y, loss


if __name__ == "__main__":
    key = jax.random.PRNGKey(0)
    k_ent, k_txt, k_num, k_idx, k_sc, k_par = jax.random.split(key, 6)

    num_entities = 64
    entity_dim = 32          # ent_emb.shape[1]
    content_dim = 16         # content_emb.shape[1]
    number_dim = 8           # num_emb.shape[1]
    in_dim = entity_dim + content_dim + number_dim   # eval_type == 'all'
    mid_dim = entity_dim // 2
    batch = 8

    ent_emb = jax.random.normal(k_ent, (num_entities, entity_dim), jnp.float32)
    content_emb = jax.random.normal(k_txt, (num_entities, content_dim), jnp.float32)
    num_emb = jax.random.normal(k_num, (num_entities, number_dim), jnp.float32)
    indices = jax.random.randint(k_idx, (batch,), 0, num_entities, jnp.int32)
    scores = jax.random.uniform(k_sc, (batch,), jnp.float32)

    params = make_params(k_par, in_dim, mid_dim)

    # One-time precompute (amortized across calls in a real eval loop).
    table = precompute_feature_table(ent_emb, content_emb, num_emb, jnp.bfloat16)

    ent_scores, loss = evaluate_model_forward(indices, scores, table, params)
    jax.block_until_ready((ent_scores, loss))

    ref_scores, ref_loss = reference_forward(
        indices, scores, ent_emb, content_emb, num_emb, params)
    assert ent_scores.shape == (batch,)
    assert jnp.allclose(ent_scores, ref_scores, atol=2e-3, rtol=2e-3)
    assert jnp.allclose(loss, ref_loss, atol=2e-3, rtol=2e-3)

    print("KERNEL_OK")
</pallas_src>

<mosaic_0001>
module attributes {stable_mosaic.version = 11 : i64} {
  func.func @_head_kernel(%arg0: i32, %arg1: memref<56x128xbf16, #tpu.memory_space<vmem>>, %arg2: memref<1x128xf32, #tpu.memory_space<vmem>>, %arg3: memref<16x56xbf16, #tpu.memory_space<vmem>>, %arg4: memref<16x1xf32, #tpu.memory_space<vmem>>, %arg5: memref<16x1xf32, #tpu.memory_space<vmem>>, %arg6: memref<16x1xf32, #tpu.memory_space<vmem>>, %arg7: memref<16x1xf32, #tpu.memory_space<vmem>>, %arg8: memref<1x1xf32, #tpu.memory_space<smem>>, %arg9: memref<1x128xf32, #tpu.memory_space<vmem>>, %arg10: memref<1x128xf32, #tpu.memory_space<vmem>>) attributes {dimension_semantics = [#tpu.dimension_semantics<parallel>], iteration_bounds = array<i64: 1>, scalar_prefetch = 0 : i64, scratch_operands = 0 : i64, tpu.core_type = #tpu.core_type<tc>, window_params = [{transform_indices = @transform_0, window_bounds = array<i64: 56, 128>}, {transform_indices = @transform_1, window_bounds = array<i64: 1, 128>}, {pipeline_mode = #tpu.pipeline_mode<synchronous>, transform_indices = @transform_2, window_bounds = array<i64: 16, 56>}, {pipeline_mode = #tpu.pipeline_mode<synchronous>, transform_indices = @transform_3, window_bounds = array<i64: 16, 1>}, {pipeline_mode = #tpu.pipeline_mode<synchronous>, transform_indices = @transform_4, window_bounds = array<i64: 16, 1>}, {pipeline_mode = #tpu.pipeline_mode<synchronous>, transform_indices = @transform_5, window_bounds = array<i64: 16, 1>}, {pipeline_mode = #tpu.pipeline_mode<synchronous>, transform_indices = @transform_6, window_bounds = array<i64: 16, 1>}, {transform_indices = @transform_7, window_bounds = array<i64: 1, 1>}, {transform_indices = @transform_8, window_bounds = array<i64: 1, 128>}, {transform_indices = @transform_9, window_bounds = array<i64: 1, 128>}]} {
    %c0 = arith.constant 0 : index
    %c0_0 = arith.constant 0 : index
    %0 = vector.load %arg3[%c0, %c0_0] : memref<16x56xbf16, #tpu.memory_space<vmem>>, vector<16x56xbf16>
    %c0_1 = arith.constant 0 : index
    %c0_2 = arith.constant 0 : index
    %1 = vector.load %arg1[%c0_1, %c0_2] : memref<56x128xbf16, #tpu.memory_space<vmem>>, vector<56x128xbf16>
    %cst = arith.constant dense<0.000000e+00> : vector<16x128xf32>
    %2 = tpu.matmul %0, %1, %cst {dimension_numbers = #tpu.dot_dimension_numbers<[1], [0], [0], [1], [0, 0, 1, 1], [], []>} : vector<16x56xbf16>, vector<56x128xbf16>, vector<16x128xf32> -> vector<16x128xf32>
    %c0_3 = arith.constant 0 : index
    %c0_4 = arith.constant 0 : index
    %3 = vector.load %arg4[%c0_3, %c0_4] : memref<16x1xf32, #tpu.memory_space<vmem>>, vector<16x1xf32>
    %4 = vector.broadcast %3 : vector<16x1xf32> to vector<16x128xf32>
    %5 = arith.addf %2, %4 : vector<16x128xf32>
    %cst_5 = arith.constant 0.000000e+00 : f32
    %6 = vector.broadcast %cst_5 : f32 to vector<16x128xf32>
    %7 = arith.cmpf oge, %5, %6 : vector<16x128xf32>
    %cst_6 = arith.constant 2.000000e-01 : f32
    %8 = vector.broadcast %cst_6 : f32 to vector<16x128xf32>
    %9 = arith.mulf %8, %5 : vector<16x128xf32>
    %10 = arith.select %7, %5, %9 : vector<16x128xi1>, vector<16x128xf32>
    %cst_7 = arith.constant dense<0.000000e+00> : vector<128xf32>
    %11 = vector.multi_reduction <add>, %10, %cst_7 [0] : vector<16x128xf32> to vector<128xf32>
    %12 = vector.shape_cast %11 : vector<128xf32> to vector<1x128xf32>
    %cst_8 = arith.constant 1.600000e+01 : f32
    %13 = vector.broadcast %cst_8 : f32 to vector<1x128xf32>
    %14 = arith.divf %12, %13 : vector<1x128xf32>
    %15 = vector.broadcast %14 : vector<1x128xf32> to vector<16x128xf32>
    %16 = arith.subf %10, %15 : vector<16x128xf32>
    %17 = arith.mulf %16, %16 : vector<16x128xf32>
    %cst_9 = arith.constant dense<0.000000e+00> : vector<128xf32>
    %18 = vector.multi_reduction <add>, %17, %cst_9 [0] : vector<16x128xf32> to vector<128xf32>
    %19 = vector.shape_cast %18 : vector<128xf32> to vector<1x128xf32>
    %cst_10 = arith.constant 1.600000e+01 : f32
    %20 = vector.broadcast %cst_10 : f32 to vector<1x128xf32>
    %21 = arith.divf %19, %20 : vector<1x128xf32>
    %cst_11 = arith.constant 9.99999974E-6 : f32
    %22 = vector.broadcast %cst_11 : f32 to vector<1x128xf32>
    %23 = arith.addf %21, %22 : vector<1x128xf32>
    %24 = math.rsqrt %23 : vector<1x128xf32>
    %25 = vector.broadcast %24 : vector<1x128xf32> to vector<16x128xf32>
    %26 = arith.mulf %16, %25 : vector<16x128xf32>
    %c0_12 = arith.constant 0 : index
    %c0_13 = arith.constant 0 : index
    %27 = vector.load %arg5[%c0_12, %c0_13] : memref<16x1xf32, #tpu.memory_space<vmem>>, vector<16x1xf32>
    %28 = vector.broadcast %27 : vector<16x1xf32> to vector<16x128xf32>
    %29 = arith.mulf %26, %28 : vector<16x128xf32>
    %c0_14 = arith.constant 0 : index
    %c0_15 = arith.constant 0 : index
    %30 = vector.load %arg6[%c0_14, %c0_15] : memref<16x1xf32, #tpu.memory_space<vmem>>, vector<16x1xf32>
    %31 = vector.broadcast %30 : vector<16x1xf32> to vector<16x128xf32>
    %32 = arith.addf %29, %31 : vector<16x128xf32>
    %c0_16 = arith.constant 0 : index
    %c0_17 = arith.constant 0 : index
    %33 = vector.load %arg7[%c0_16, %c0_17] : memref<16x1xf32, #tpu.memory_space<vmem>>, vector<16x1xf32>
    %34 = vector.broadcast %33 : vector<16x1xf32> to vector<16x128xf32>
    %35 = arith.mulf %32, %34 : vector<16x128xf32>
    %cst_18 = arith.constant dense<0.000000e+00> : vector<128xf32>
    %36 = vector.multi_reduction <add>, %35, %cst_18 [0] : vector<16x128xf32> to vector<128xf32>
    %37 = vector.shape_cast %36 : vector<128xf32> to vector<1x128xf32>
    %c0_19 = arith.constant 0 : index
    %c0_20 = arith.constant 0 : index
    %38 = memref.load %arg8[%c0_19, %c0_20] : memref<1x1xf32, #tpu.memory_space<smem>>
    %39 = vector.broadcast %38 : f32 to vector<1x128xf32>
    %40 = arith.addf %37, %39 : vector<1x128xf32>
    %cst_21 = arith.constant 0.000000e+00 : f32
    %41 = vector.broadcast %cst_21 : f32 to vector<1x128xf32>
    %42 = arith.subf %41, %40 : vector<1x128xf32>
    %43 = math.exp %42 : vector<1x128xf32>
    %cst_22 = arith.constant 1.000000e+00 : f32
    %44 = vector.broadcast %cst_22 : f32 to vector<1x128xf32>
    %45 = arith.addf %44, %43 : vector<1x128xf32>
    %46 = tpu.reciprocal %45 : vector<1x128xf32> -> vector<1x128xf32>
    %c0_23 = arith.constant 0 : index
    %c0_24 = arith.constant 0 : index
    %47 = vector.load %arg9[%c0_23, %c0_24] : memref<1x128xf32, #tpu.memory_space<vmem>>, vector<1x128xf32>
    tpu.vector_store %arg9[%c0_23, %c0_24], %46 {strides = array<i32>} : memref<1x128xf32, #tpu.memory_space<vmem>>, vector<1x128xf32>,
    %c0_i32 = arith.constant 0 : i32
    %48 = arith.cmpi ne, %arg0, %c0_i32 : i32
    %49 = arith.extui %48 : i1 to i32
    %c0_i32_25 = arith.constant 0 : i32
    %50 = arith.cmpi ne, %49, %c0_i32_25 : i32
    scf.if %50 {
      %c0_28 = arith.constant 0 : index
      %c0_29 = arith.constant 0 : index
      %54 = vector.load %arg2[%c0_28, %c0_29] : memref<1x128xf32, #tpu.memory_space<vmem>>, vector<1x128xf32>
      %55 = arith.subf %46, %54 : vector<1x128xf32>
      %56 = arith.mulf %55, %55 : vector<1x128xf32>
      %cst_30 = arith.constant dense<0.000000e+00> : vector<1xf32>
      %57 = vector.multi_reduction <add>, %56, %cst_30 [1] : vector<1x128xf32> to vector<1xf32>
      %58 = vector.shape_cast %57 : vector<1xf32> to vector<1x1xf32>
      %cst_31 = arith.constant 0.000000e+00 : f32
      %59 = vector.broadcast %cst_31 : f32 to vector<1x128xf32>
      %60 = vector.broadcast %58 : vector<1x1xf32> to vector<1x128xf32>
      %61 = arith.addf %60, %59 : vector<1x128xf32>
      %c0_32 = arith.constant 0 : index
      %c0_33 = arith.constant 0 : index
      %62 = vector.load %arg10[%c0_32, %c0_33] : memref<1x128xf32, #tpu.memory_space<vmem>>, vector<1x128xf32>
      tpu.vector_store %arg10[%c0_32, %c0_33], %61 {strides = array<i32>} : memref<1x128xf32, #tpu.memory_space<vmem>>, vector<1x128xf32>,
    } else {
    }
    %c0_i32_26 = arith.constant 0 : i32
    %51 = arith.cmpi eq, %arg0, %c0_i32_26 : i32
    %52 = arith.extui %51 : i1 to i32
    %c0_i32_27 = arith.constant 0 : i32
    %53 = arith.cmpi ne, %52, %c0_i32_27 : i32
    scf.if %53 {
      %54 = tpu.iota {dimensions = array<i32: 1>} : vector<1x128xi32>
      %c128_i32 = arith.constant 128 : i32
      %55 = arith.muli %arg0, %c128_i32 : i32
      %56 = vector.broadcast %55 : i32 to vector<1x128xi32>
      %57 = arith.addi %56, %54 : vector<1x128xi32>
      %c8_i32 = arith.constant 8 : i32
      %58 = vector.broadcast %c8_i32 : i32 to vector<1x128xi32>
      %59 = arith.cmpi slt, %57, %58 : vector<1x128xi32>
      %c0_28 = arith.constant 0 : index
      %c0_29 = arith.constant 0 : index
      %60 = vector.load %arg2[%c0_28, %c0_29] : memref<1x128xf32, #tpu.memory_space<vmem>>, vector<1x128xf32>
      %61 = arith.subf %46, %60 : vector<1x128xf32>
      %cst_30 = arith.constant 0.000000e+00 : f32
      %62 = vector.broadcast %cst_30 : f32 to vector<1x128xf32>
      %63 = arith.select %59, %61, %62 : vector<1x128xi1>, vector<1x128xf32>
      %64 = arith.mulf %63, %63 : vector<1x128xf32>
      %cst_31 = arith.constant dense<0.000000e+00> : vector<1xf32>
      %65 = vector.multi_reduction <add>, %64, %cst_31 [1] : vector<1x128xf32> to vector<1xf32>
      %66 = vector.shape_cast %65 : vector<1xf32> to vector<1x1xf32>
      %cst_32 = arith.constant 0.000000e+00 : f32
      %67 = vector.broadcast %cst_32 : f32 to vector<1x128xf32>
      %68 = vector.broadcast %66 : vector<1x1xf32> to vector<1x128xf32>
      %69 = arith.addf %68, %67 : vector<1x128xf32>
      %c0_33 = arith.constant 0 : index
      %c0_34 = arith.constant 0 : index
      %70 = vector.load %arg10[%c0_33, %c0_34] : memref<1x128xf32, #tpu.memory_space<vmem>>, vector<1x128xf32>
      tpu.vector_store %arg10[%c0_33, %c0_34], %69 {strides = array<i32>} : memref<1x128xf32, #tpu.memory_space<vmem>>, vector<1x128xf32>,
    } else {
    }
    return
  }
  func.func @transform_0(%arg0: i32) -> (i32, i32) {
    %c0_i32 = arith.constant 0 : i32
    %c0_i32_0 = arith.constant 0 : i32
    return %c0_i32, %arg0 : i32, i32
  }
  func.func @transform_1(%arg0: i32) -> (i32, i32) {
    %c0_i32 = arith.constant 0 : i32
    %c0_i32_0 = arith.constant 0 : i32
    return %c0_i32, %arg0 : i32, i32
  }
  func.func @transform_2(%arg0: i32) -> (i32, i32) {
    %c0_i32 = arith.constant 0 : i32
    %c0_i32_0 = arith.constant 0 : i32
    %c0_i32_1 = arith.constant 0 : i32
    return %c0_i32, %c0_i32_0 : i32, i32
  }
  func.func @transform_3(%arg0: i32) -> (i32, i32) {
    %c0_i32 = arith.constant 0 : i32
    %c0_i32_0 = arith.constant 0 : i32
    %c0_i32_1 = arith.constant 0 : i32
    return %c0_i32, %c0_i32_0 : i32, i32
  }
  func.func @transform_4(%arg0: i32) -> (i32, i32) {
    %c0_i32 = arith.constant 0 : i32
    %c0_i32_0 = arith.constant 0 : i32
    %c0_i32_1 = arith.constant 0 : i32
    return %c0_i32, %c0_i32_0 : i32, i32
  }
  func.func @transform_5(%arg0: i32) -> (i32, i32) {
    %c0_i32 = arith.constant 0 : i32
    %c0_i32_0 = arith.constant 0 : i32
    %c0_i32_1 = arith.constant 0 : i32
    return %c0_i32, %c0_i32_0 : i32, i32
  }
  func.func @transform_6(%arg0: i32) -> (i32, i32) {
    %c0_i32 = arith.constant 0 : i32
    %c0_i32_0 = arith.constant 0 : i32
    %c0_i32_1 = arith.constant 0 : i32
    return %c0_i32, %c0_i32_0 : i32, i32
  }
  func.func @transform_7(%arg0: i32) -> (i32, i32) {
    %c0_i32 = arith.constant 0 : i32
    %c0_i32_0 = arith.constant 0 : i32
    %c0_i32_1 = arith.constant 0 : i32
    return %c0_i32, %c0_i32_0 : i32, i32
  }
  func.func @transform_8(%arg0: i32) -> (i32, i32) {
    %c0_i32 = arith.constant 0 : i32
    %c0_i32_0 = arith.constant 0 : i32
    return %c0_i32, %arg0 : i32, i32
  }
  func.func @transform_9(%arg0: i32) -> (i32, i32) {
    %c0_i32 = arith.constant 0 : i32
    %c0_i32_0 = arith.constant 0 : i32
    return %arg0, %c0_i32 : i32, i32
  }
}

</mosaic_0001>

<bundles_post_ra>
// kernel: tpu_custom_call.1
= control target key start
LH: loop header
LB: loop body
LE: loop exit
PB: predicated region body
PF: predicated region fallthrough
CT: control target
= control target key end

     0   :  { %16 = vsyncpa [#allocation4], 0  ;;  %v370_v1 = vmov 0.0   ;;  %vm371_vm0 = vmmov 0   ;;  %v372_v4 = vmov 0   ;;  %s494_s0 = inlined_call_operand.vmem [shape: bf16[56,128], index: 0, kind: input, shape index: {}]   ;;  %s495_s1 = inlined_call_operand.vmem [shape: f32[1,128], index: 1, kind: input, shape index: {}]   ;;  %s496_s2 = inlined_call_operand.vmem [shape: bf16[16,56], index: 2, kind: input, shape index: {}]   ;;  %s497_s3 = inlined_call_operand.vmem [shape: f32[16,1], index: 3, kind: input, shape index: {}]   ;;  %s498_s4 = inlined_call_operand.vmem [shape: f32[16,1], index: 4, kind: input, shape index: {}]   ;;  %s499_s5 = inlined_call_operand.vmem [shape: f32[16,1], index: 5, kind: input, shape index: {}]   ;;  %s500_s6 = inlined_call_operand.vmem [shape: f32[16,1], index: 6, kind: input, shape index: {}]   ;;  %s501_s7 = inlined_call_operand.<no memory space> [shape: f32[1,1], index: 7, kind: input, shape index: {}]   ;;  %s502_s8 = inlined_call_operand.hbm [shape: f32[1,128], index: 8, kind: output, shape index: {0}]   ;;  %s503_s9 = inlined_call_operand.hbm [shape: f32[1,128], index: 9, kind: output, shape index: {1}]  }
   0x1   :  { %v311_v0 = vld [vmem:[%s494_s0] sm:$0xff]   ;;  %292 = vmatprep.subr.bf16.mxu0 %v370_v1  ;;  %v312_v2 = vld [vmem:[%s494_s0 + $0x8] sm:$0xff]   ;;  %300 = vmatprep.mubr.msk.bf16.mxu0 %vm371_vm0, %v370_v1  ;;  %v313_v5 = vld [vmem:[%s494_s0 + $0x10] sm:$0xff]  }
   0x2   :  { %293 = vmatpush3.bf16.msra.mxu0 %v311_v0  ;;  %v44_v3 = vld [vmem:[%s497_s3] sm:$0xff]  ;;  %309 = vset.pattern.permute.xlu0 %v372_v4  ;;  %v314_v7 = vld [vmem:[%s494_s0 + $0x18] ss:$0 sps:$4 sm:$0xff]   ;;  %v45_v8 = vld [vmem:[%s497_s3 + $0x8] sm:$0xff] }
   0x3   :  { %294 = vmatprep.subr.bf16.mxu0 %v370_v1  ;;  %310 = vset.pattern.permute.xlu1 %v372_v4  ;;  %v162_v6 = vld [vmem:[%s498_s4] sm:$0xff] }
   0x4   :  { %48 = vperm.xlu0 %309, %v44_v3   ;;  %166 = vperm.xlu1 %310, %v162_v6  }
   0x6   :  { %295 = vmatpush3.bf16.msra.mxu0 %v312_v2 }
   0x7   :  { %296 = vmatprep.subr.bf16.mxu0 %v370_v1 }
   0x8   :  { %17 = vsyncpa [#allocation6], 0  ;;  %vm86_vm1 = vcmask 1043456   ;;  %v163_v9 = vld [vmem:[%s498_s4 + $0x8] sm:$0xff]  ;;  %53 = vperm.xlu0 %309, %v45_v8   ;;  %v176_v11 = vld [vmem:[%s499_s5] sm:$0xff]  ;;  %vm82_vm2 = vcmask 457728   ;;  %v212_v6 = vstv %s501_s7 }
   0x9   :  { %v88_v10 = vsel %vm86_vm1, %v314_v7, 0  ;;  %171 = vperm.xlu1 %310, %v163_v9   ;;  %v177_v12 = vld [vmem:[%s499_s5 + $0x8] sm:$0xff]  ;;  %v315_v13 = vld [vmem:[%s496_s2] sm:$0xff]   ;;  %vm247_vm6 = vcmask 1040384   ;;  %s373_s7 = smov [#allocation3]  }
   0xa   :  { %297 = vmatpush3.bf16.msra.mxu0 %v313_v5  ;;  %v190_v14 = vld [vmem:[%s500_s6] sm:$0xff]  ;;  %v191_v15 = vld [vmem:[%s500_s6 + $0x8] sm:$0xff]  ;;  %s259_s12 = sshll.u32 %s373_s7, 4  ;;  %s260_s12 = int_to_ptr.vmem [resolvable:$true] %s259_s12 }
   0xb   :  { %298 = vmatprep.subr.bf16.mxu0 %v370_v1  ;;  %s322_s13 = scalar_lea.vmem %s260_s12, 16  ;;  %s326_s14 = scalar_lea.vmem %s260_s12, 32 }
   0xc   :  { %180 = vperm.xlu0 %309, %v176_v11   ;;  %p323_p0 = scmp.ne.s32.totalorder %s260_s12, %s322_s13  ;;  %p327_p1 = scmp.lt.s32.totalorder %s260_s12, %s260_s12 }
   0xd   :  { %185 = vperm.xlu1 %310, %v177_v12   ;;  %p328_p2 = scmp.lt.s32.totalorder %s326_s14, %s322_s13 }
   0xe   :  { %299 = vmatpush3.bf16.msra.mxu0 %v88_v10 }
   0xf   :  { %p329_p3 = por %p328_p2, %p327_p1 }
  0x10   :  { %194 = vperm.xlu0 %309, %v190_v14  }
  0x11   :  { %301 = vmatmul.mubr.msk.bf16.vlgmr.msra.gmra.mrb[0].mxu0 %vm82_vm2, %v315_v13  ;;  %199 = vperm.xlu1 %310, %v191_v15   ;;  %v237_v13 = vlaneseq  ;;  %v243_v15 = vld [vmem:[%s495_s1] sm:$0x1]  ;;  %p330_p4 = pnand %p329_p3, %p323_p0 }
  0x13   :  { %v238_v14 = vand.u32 127, %v237_v13 }
  0x15   :  { %vm242_vm5 = vcmp.lt.s32.totalorder %v238_v14, 8 }
  0x83   :  { %v49_v16 = vpop.permute.xlu0 %48  ;;  %v167_v48 = vpop.permute.xlu1 %166 }
  0x87   :  { %v54_v20 = vpop.permute.xlu0 %53 }
  0x88   :  { %v172_v50 = vpop.permute.xlu1 %171 }
  0x8b   :  { %v181_v52 = vpop.permute.xlu0 %180 }
  0x8c   :  { %v186_v53 = vpop.permute.xlu1 %185 }
  0x8f   :  { %v195_v60 = vpop.permute.xlu0 %194 }
  0x90   :  { %v200_v61 = vpop.permute.xlu1 %199 }
  0xe4   :  { %v124_v17 = vpop.f32.mrb[0].mxu0 }
  0xe5   :  { %v125_v18 = vadd.f32 %v124_v17, %v49_v16  ;;  %v302_v19 = vpop.f32.mrb[1].mxu0 }
  0xe6   :  { %v127_v21 = vpop.f32.mrb[2].mxu0 }
  0xe7   :  { %v133_v22 = vmul.f32 0.2, %v125_v18  ;;  %v128_v23 = vadd.f32 %v127_v21, %v54_v20  ;;  %v303_v24 = vpop.f32.mrb[3].mxu0  ;;  %vm131_vm3 = vcmp.ge.f32.partialorder %v125_v18, 0.0 }
  0xe9   :  { %vm132_vm4 = vcmp.ge.f32.partialorder %v128_v23, 0.0  ;;  %v134_v25 = vmul.f32 0.2, %v128_v23  ;;  %v135_v26 = vsel %vm131_vm3, %v125_v18, %v133_v22 }
  0xeb   :  { %v136_v27 = vsel %vm132_vm4, %v128_v23, %v134_v25 }
  0xec   :  { %v137_v28 = vadd.f32 %v136_v27, %v135_v26 }
  0xee   :  { %v138_v29 = vrot.slane %v137_v28, 4 }
  0xf0   :  { %v139_v30 = vadd.f32 %v138_v29, %v137_v28 }
  0xf2   :  { %v140_v31 = vrot.slane %v139_v30, 2 }
  0xf4   :  { %v141_v32 = vadd.f32 %v140_v31, %v139_v30 }
  0xf6   :  { %v142_v33 = vrot.slane %v141_v32, 1 }
  0xf8   :  { %v143_v34 = vadd.f32 %v142_v33, %v141_v32 }
  0xfa   :  { %v145_v35 = vmul.f32 0.0625, %v143_v34 }
  0xfc   :  { %v147_v36 = vsub.f32 %v136_v27, %v145_v35  ;;  %v146_v37 = vsub.f32 %v135_v26, %v145_v35 }
  0xfe   :  { %v149_v38 = vmul.f32 %v147_v36, %v147_v36  ;;  %v148_v39 = vmul.f32 %v146_v37, %v146_v37 }
 0x100   :  { %v150_v40 = vadd.f32 %v149_v38, %v148_v39 }
 0x102   :  { %v151_v41 = vrot.slane %v150_v40, 4 }
 0x104   :  { %v152_v42 = vadd.f32 %v151_v41, %v150_v40 }
 0x106   :  { %v153_v43 = vrot.slane %v152_v42, 2 }
 0x108   :  { %v154_v44 = vadd.f32 %v153_v43, %v152_v42 }
 0x10a   :  { %v155_v45 = vrot.slane %v154_v44, 1 }
 0x10c   :  { %v156_v46 = vadd.f32 %v155_v45, %v154_v44 }
 0x10e   :  { %v157_v47 = vmul.f32 0.0625, %v156_v46 }
 0x110   :  { %v158_v49 = vadd.f32 1e-05, %v157_v47 }
 0x112   :  { %316 = vrsqrt.f32 %v158_v49 }
 0x11c   :  { %v317_v51 = vpop.eup %316 }
 0x11d   :  { %v160_v54 = vmul.f32 %v317_v51, %v146_v37  ;;  %v161_v55 = vmul.f32 %v317_v51, %v147_v36 }
 0x11f   :  { %v174_v56 = vmul.f32 %v167_v48, %v160_v54  ;;  %v175_v57 = vmul.f32 %v172_v50, %v161_v55 }
 0x121   :  { %v188_v58 = vadd.f32 %v181_v52, %v174_v56  ;;  %v189_v59 = vadd.f32 %v186_v53, %v175_v57 }
 0x123   :  { %v202_v62 = vmul.f32 %v195_v60, %v188_v58  ;;  %v203_v63 = vmul.f32 %v200_v61, %v189_v59 }
 0x125   :  { %v204_v0 = vadd.f32 %v203_v63, %v202_v62 }
 0x127   :  { %v205_v1 = vrot.slane %v204_v0, 4 }
 0x129   :  { %v206_v2 = vadd.f32 %v205_v1, %v204_v0 }
 0x12b   :  { %v207_v3 = vrot.slane %v206_v2, 2 }
 0x12d   :  { %v208_v4 = vadd.f32 %v207_v3, %v206_v2 }
 0x12f   :  { %v209_v5 = vrot.slane %v208_v4, 1 }
 0x131   :  { %v210_v7 = vadd.f32 %v209_v5, %v208_v4 }
 0x133   :  { %v213_v8 = vadd.f32 %v212_v6, %v210_v7 }
 0x135   :  { %v214_v9 = vsub.f32 0.0, %v213_v8 }
 0x137   :  { %v215_v10 = vmul.f32 1.442695, %v214_v9 }
 0x139   :  { %318 = vpow2.f32 %v215_v10 }
 0x143   :  { %v319_v11 = vpop.eup %318 }
 0x144   :  { %v217_v12 = vadd.f32 1.0, %v319_v11 }
 0x146   :  { %320 = vrcp.f32 %v217_v12 }
 0x150   :  { %v321_v16 = vpop.eup %320 }
 0x151   :  { %219 = vst [vmem:[#allocation3] sm:$0x1] %v321_v16  ;;  %v244_v17 = vsub.f32 %v321_v16, %v243_v15 }
 0x153   :  { %v245_v18 = vsel %vm242_vm5, %v244_v17, 0.0 }
 0x154   :  { %v246_v19 = vmul.f32 %v245_v18, %v245_v18 }
 0x156   :  { %v248_v20 = vsel %vm247_vm6, %v246_v19, 0.0 }
 0x157   :  { %249 = vadd.xlane.f32.xlu0 %v248_v20 }
 0x158   :  { %333 = shalt.err (!%p330_p4)
}
 0x159   :  { %s334_s16 = scalar_lea.hbm %s502_s8, 16 }
 0x15a   :  { %p335_p5 = scmp.ne.s32.totalorder %s502_s8, %s334_s16  ;;  %p338_p6 = scmp.lt.u32.totalorder %s334_s16, %s502_s8 }
 0x15c   :  { %p340_p7 = pnand %p338_p6, %p335_p5 }
 0x15e   :  { %343 = shalt.err (!%p340_p7)
}
 0x15f   :  { %262 = dma.vmem_to_hbm [thread:$0]  %s260_s12, 16, %s502_s8, [#allocation4]  }
 0x160   :  { %s374_s23 = smov [#allocation5]  }
 0x161   :  { %s269_s24 = sshll.u32 %s374_s23, 4  ;;  %s270_s24 = int_to_ptr.vmem [resolvable:$true] %s269_s24 }
 0x162   :  { %s344_s25 = scalar_lea.vmem %s270_s24, 16  ;;  %s348_s26 = scalar_lea.vmem %s270_s24, 32 }
 0x163   :  { %p345_p8 = scmp.ne.s32.totalorder %s270_s24, %s344_s25  ;;  %p349_p9 = scmp.lt.s32.totalorder %s270_s24, %s270_s24 }
 0x164   :  { %p350_p10 = scmp.lt.s32.totalorder %s348_s26, %s344_s25 }
 0x166   :  { %p351_p11 = por %p350_p10, %p349_p9 }
 0x168   :  { %p352_p12 = pnand %p351_p11, %p345_p8 }
 0x1e4   :  { %v250_v21 = vpop.xlane.xlu0 %249 }
 0x1e5   :  { %252 = vst [vmem:[#allocation5] sm:$0x1] %v250_v21 }
 0x1e6   :  { %355 = shalt.err (!%p352_p12)
}
 0x1e7   :  { %s356_s3 = scalar_lea.hbm %s503_s9, 16 }
 0x1e8   :  { %p357_p13 = scmp.ne.s32.totalorder %s503_s9, %s356_s3  ;;  %p360_p0 = scmp.lt.u32.totalorder %s356_s3, %s503_s9 }
 0x1ea   :  { %p362_p1 = pnand %p360_p0, %p357_p13 }
 0x1ec   :  { %365 = shalt.err (!%p362_p1)
}
 0x1ed   :  { %272 = dma.vmem_to_hbm [thread:$0]  %s270_s24, 16, %s503_s9, [#allocation6]  }
 0x1ee   :  { %366 = dma.done.wait [#allocation4], 16  }
 0x1ef   :  { %367 = vsyncadd [#allocation4], 4294967280 }
 0x1f0   :  { %368 = dma.done.wait [#allocation6], 16  }
 0x1f1   :  { %369 = vsyncadd [#allocation6], 4294967280 }
 0x1f2   :  { %279 = vsyncpa [#allocation4], 1 }
 0x1f3   :  { %280 = vsyncpa [#allocation6], 1 }

</bundles_post_ra>
